<compile_context>
chip_gen: v5e
topology: v5e:2x2
jax: 0.10.0
libtpu: 0.0.40
codegen_flags: <defaults>
</compile_context>

<pallas_src>
import functools

import jax
import jax.numpy as jnp
import numpy as np
from jax.experimental import pallas as pl
from jax.experimental.pallas import tpu as pltpu

NUM_HEADS = 4
EMBED_DIM = 32
HEAD_DIM = EMBED_DIM // NUM_HEADS
RMS_EPS = 1e-6  # standard RMSNorm epsilon


# ----------------------------------------------------------------------------
# Fused Pallas kernel: QKV projections + RMSNorm + attention + out-projection
# ----------------------------------------------------------------------------
def _fused_kernel(x_ref, y_ref,
                  wqkv_x_ref, bqkv_x_ref, wqkv_y_ref, bqkv_y_ref,
                  seg_ref, gq1_ref, gk1_ref, gq2_ref, gk2_ref,
                  wo_ref, bo_ref,
                  o_ref, *, num_heads, head_dim, scale):
    f32 = jnp.float32
    E = num_heads * head_dim

    x = x_ref[0]  # (Lx, E) f32
    y = y_ref[0]  # (Ly, E) f32

    # Fused QKV projection per stream: one MXU call with N = 3E lanes.
    qkv_x = jnp.dot(x, wqkv_x_ref[...], preferred_element_type=f32) + bqkv_x_ref[...]
    qkv_y = jnp.dot(y, wqkv_y_ref[...], preferred_element_type=f32) + bqkv_y_ref[...]

    qx, kx, vx = qkv_x[:, :E], qkv_x[:, E:2 * E], qkv_x[:, 2 * E:]
    qy, ky, vy = qkv_y[:, :E], qkv_y[:, E:2 * E], qkv_y[:, 2 * E:]

    seg = seg_ref[...]  # (E, E) block-diagonal ones: per-head reduction matrix

    def rmsnorm(t, gamma_row):
        # per-head sum of squares via matmul keeps the (L, E) lane layout
        ssum = jnp.dot(t * t, seg, preferred_element_type=f32)
        inv = jax.lax.rsqrt(ssum * (1.0 / head_dim) + RMS_EPS)
        return t * inv * gamma_row

    qx = rmsnorm(qx, gq1_ref[...])
    kx = rmsnorm(kx, gk1_ref[...])
    qy = rmsnorm(qy, gq2_ref[...])
    ky = rmsnorm(ky, gk2_ref[...])

    # concat on sequence dim: y tokens first, then x tokens
    q = jnp.concatenate([qy, qx], axis=0)  # (L, E) f32
    k = jnp.concatenate([ky, kx], axis=0)
    v = jnp.concatenate([vy, vx], axis=0)

    # emulate flash_attn's .half(): bf16 MXU operands, f32 accumulation/softmax
    qb = q.astype(jnp.bfloat16)
    kb = k.astype(jnp.bfloat16)
    vb = v.astype(jnp.bfloat16)

    outs = []
    for h in range(num_heads):  # statically unrolled (4 heads)
        sl = slice(h * head_dim, (h + 1) * head_dim)
        qh, kh, vh = qb[:, sl], kb[:, sl], vb[:, sl]
        # contract on last dim of both operands (no materialized transpose)
        s = jax.lax.dot_general(qh, kh, (((1,), (1,)), ((), ())),
                                preferred_element_type=f32) * scale  # (L, L) f32
        m = jnp.max(s, axis=-1, keepdims=True)
        p = jnp.exp(s - m)
        l = jnp.sum(p, axis=-1, keepdims=True)
        p = p * pl.reciprocal(l, approx=True)        # divide -> EUP slot
        oh = jnp.dot(p.astype(jnp.bfloat16), vh,      # bf16 MXU, f32 acc
                     preferred_element_type=f32)      # (L, D)
        outs.append(oh)
    att = jnp.concatenate(outs, axis=-1)              # (L, E) f32
    att = att.astype(jnp.bfloat16).astype(f32)        # flash output dtype -> f32

    out = jnp.dot(att, wo_ref[...], preferred_element_type=f32) + bo_ref[...]
    o_ref[0, :, :] = out.astype(o_ref.dtype)


# ----------------------------------------------------------------------------
# Wrapper
# ----------------------------------------------------------------------------
def init_params(key, embed_dim=EMBED_DIM, head_dim=HEAD_DIM):
    names = ["q1", "k1", "v1", "q2", "k2", "v2", "out"]
    params = {}
    keys = jax.random.split(key, 2 * len(names))
    scale = 1.0 / np.sqrt(embed_dim)
    for i, n in enumerate(names):
        params[f"w_{n}"] = (
            jax.random.normal(keys[2 * i], (embed_dim, embed_dim), jnp.float32) * scale)
        params[f"b_{n}"] = (
            jax.random.normal(keys[2 * i + 1], (embed_dim,), jnp.float32) * 0.01)
    for n in ["q1", "q2", "k1", "k2"]:
        params[f"g_{n}"] = jnp.ones((head_dim,), jnp.float32)  # RMSNorm weight
    return params


def stable_cross_flash_attention(params, x, y,
                                 num_heads=NUM_HEADS, embed_dim=EMBED_DIM):
    B, Lx, E = x.shape
    _, Ly, _ = y.shape
    H = num_heads
    D = E // H
    L = Lx + Ly

    # Pack per-stream QKV weights into one (E, 3E) matmul each.
    wqkv_x = jnp.concatenate([params["w_q1"], params["w_k1"], params["w_v1"]], axis=1)
    bqkv_x = jnp.concatenate([params["b_q1"], params["b_k1"], params["b_v1"]]).reshape(1, 3 * E)
    wqkv_y = jnp.concatenate([params["w_q2"], params["w_k2"], params["w_v2"]], axis=1)
    bqkv_y = jnp.concatenate([params["b_q2"], params["b_k2"], params["b_v2"]]).reshape(1, 3 * E)

    # block-diagonal ones matrix: (t*t) @ seg == per-head sum of squares, broadcast
    head_of_lane = jnp.arange(E) // D
    seg = (head_of_lane[:, None] == head_of_lane[None, :]).astype(jnp.float32)

    def tile_gamma(g):  # per-head gamma replicated across the E lanes
        return jnp.tile(g, H).reshape(1, E)

    gq1, gk1 = tile_gamma(params["g_q1"]), tile_gamma(params["g_k1"])
    gq2, gk2 = tile_gamma(params["g_q2"]), tile_gamma(params["g_k2"])
    wo = params["w_out"]
    bo = params["b_out"].reshape(1, E)

    kernel = functools.partial(_fused_kernel, num_heads=H, head_dim=D,
                               scale=1.0 / float(np.sqrt(D)))

    def full2d(shape):
        return pl.BlockSpec(shape, lambda b: (0, 0))

    out = pl.pallas_call(
        kernel,
        out_shape=jax.ShapeDtypeStruct((B, L, E), jnp.float32),
        grid=(B,),
        in_specs=[
            pl.BlockSpec((1, Lx, E), lambda b: (b, 0, 0)),   # x
            pl.BlockSpec((1, Ly, E), lambda b: (b, 0, 0)),   # y
            full2d((E, 3 * E)), full2d((1, 3 * E)),          # stream-x QKV w, b
            full2d((E, 3 * E)), full2d((1, 3 * E)),          # stream-y QKV w, b
            full2d((E, E)),                                  # segment matrix
            full2d((1, E)), full2d((1, E)),                  # gamma q1, k1
            full2d((1, E)), full2d((1, E)),                  # gamma q2, k2
            full2d((E, E)), full2d((1, E)),                  # out projection w, b
        ],
        out_specs=pl.BlockSpec((1, L, E), lambda b: (b, 0, 0)),
        compiler_params=pltpu.CompilerParams(
            dimension_semantics=("parallel",)),              # v7x: 2 TCs get work
    )(x, y, wqkv_x, bqkv_x, wqkv_y, bqkv_y, seg,
      gq1, gk1, gq2, gk2, wo, bo)

    return out[:, Ly:], out[:, :Ly]


# ----------------------------------------------------------------------------
# Pure-JAX reference (mirrors the kernel's bf16 casts)
# ----------------------------------------------------------------------------
def reference(params, x, y, num_heads=NUM_HEADS):
    B, Lx, E = x.shape
    _, Ly, _ = y.shape
    H = num_heads
    D = E // H

    def lin(inp, name):
        return inp @ params[f"w_{name}"] + params[f"b_{name}"]

    def heads(t, Li):
        return t.reshape(B, Li, H, D)

    def rms(t, g):
        ms = jnp.mean(t * t, axis=-1, keepdims=True)
        return t * jax.lax.rsqrt(ms + RMS_EPS) * g

    qx = rms(heads(lin(x, "q1"), Lx), params["g_q1"])
    kx = rms(heads(lin(x, "k1"), Lx), params["g_k1"])
    vx = heads(lin(x, "v1"), Lx)
    qy = rms(heads(lin(y, "q2"), Ly), params["g_q2"])
    ky = rms(heads(lin(y, "k2"), Ly), params["g_k2"])
    vy = heads(lin(y, "v2"), Ly)

    q = jnp.concatenate([qy, qx], axis=1).astype(jnp.bfloat16).astype(jnp.float32)
    k = jnp.concatenate([ky, kx], axis=1).astype(jnp.bfloat16).astype(jnp.float32)
    v = jnp.concatenate([vy, vx], axis=1).astype(jnp.bfloat16).astype(jnp.float32)

    s = jnp.einsum("bqhd,bkhd->bhqk", q, k) / np.sqrt(D)
    p = jax.nn.softmax(s, axis=-1).astype(jnp.bfloat16).astype(jnp.float32)
    att = jnp.einsum("bhqk,bkhd->bqhd", p, v).astype(jnp.bfloat16).astype(jnp.float32)
    att = att.reshape(B, Lx + Ly, E)
    out = att @ params["w_out"] + params["b_out"]
    return out[:, Ly:], out[:, :Ly]


if __name__ == "__main__":
    key = jax.random.PRNGKey(0)
    kx, ky_, kp = jax.random.split(key, 3)

    B, Lx, Ly = 2, 8, 8
    x = jax.random.normal(kx, (B, Lx, EMBED_DIM), jnp.float32)
    y = jax.random.normal(ky_, (B, Ly, EMBED_DIM), jnp.float32)
    params = init_params(kp)

    out_x, out_y = stable_cross_flash_attention(params, x, y)
    out_x = jax.block_until_ready(out_x)
    out_y = jax.block_until_ready(out_y)

    ref_x, ref_y = reference(params, x, y)
    assert out_x.shape == (B, Lx, EMBED_DIM) and out_y.shape == (B, Ly, EMBED_DIM)
    np.testing.assert_allclose(np.asarray(out_x), np.asarray(ref_x),
                               rtol=2e-2, atol=2e-2)
    np.testing.assert_allclose(np.asarray(out_y), np.asarray(ref_y),
                               rtol=2e-2, atol=2e-2)
    print("KERNEL_OK")
</pallas_src>

<mosaic_0001>
module attributes {stable_mosaic.version = 11 : i64} {
  func.func @_fused_kernel(%arg0: i32, %arg1: memref<1x8x32xf32, #tpu.memory_space<vmem>>, %arg2: memref<1x8x32xf32, #tpu.memory_space<vmem>>, %arg3: memref<32x96xf32, #tpu.memory_space<vmem>>, %arg4: memref<1x96xf32, #tpu.memory_space<vmem>>, %arg5: memref<32x96xf32, #tpu.memory_space<vmem>>, %arg6: memref<1x96xf32, #tpu.memory_space<vmem>>, %arg7: memref<32x32xf32, #tpu.memory_space<vmem>>, %arg8: memref<1x32xf32, #tpu.memory_space<vmem>>, %arg9: memref<1x32xf32, #tpu.memory_space<vmem>>, %arg10: memref<1x32xf32, #tpu.memory_space<vmem>>, %arg11: memref<1x32xf32, #tpu.memory_space<vmem>>, %arg12: memref<32x32xf32, #tpu.memory_space<vmem>>, %arg13: memref<1x32xf32, #tpu.memory_space<vmem>>, %arg14: memref<1x16x32xf32, #tpu.memory_space<vmem>>) attributes {dimension_semantics = [#tpu.dimension_semantics<parallel>], iteration_bounds = array<i64: 2>, scalar_prefetch = 0 : i64, scratch_operands = 0 : i64, tpu.core_type = #tpu.core_type<tc>, window_params = [{transform_indices = @transform_0, window_bounds = array<i64: 1, 8, 32>}, {transform_indices = @transform_1, window_bounds = array<i64: 1, 8, 32>}, {pipeline_mode = #tpu.pipeline_mode<synchronous>, transform_indices = @transform_2, window_bounds = array<i64: 32, 96>}, {pipeline_mode = #tpu.pipeline_mode<synchronous>, transform_indices = @transform_3, window_bounds = array<i64: 1, 96>}, {pipeline_mode = #tpu.pipeline_mode<synchronous>, transform_indices = @transform_4, window_bounds = array<i64: 32, 96>}, {pipeline_mode = #tpu.pipeline_mode<synchronous>, transform_indices = @transform_5, window_bounds = array<i64: 1, 96>}, {pipeline_mode = #tpu.pipeline_mode<synchronous>, transform_indices = @transform_6, window_bounds = array<i64: 32, 32>}, {pipeline_mode = #tpu.pipeline_mode<synchronous>, transform_indices = @transform_7, window_bounds = array<i64: 1, 32>}, {pipeline_mode = #tpu.pipeline_mode<synchronous>, transform_indices = @transform_8, window_bounds = array<i64: 1, 32>}, {pipeline_mode = #tpu.pipeline_mode<synchronous>, transform_indices = @transform_9, window_bounds = array<i64: 1, 32>}, {pipeline_mode = #tpu.pipeline_mode<synchronous>, transform_indices = @transform_10, window_bounds = array<i64: 1, 32>}, {pipeline_mode = #tpu.pipeline_mode<synchronous>, transform_indices = @transform_11, window_bounds = array<i64: 32, 32>}, {pipeline_mode = #tpu.pipeline_mode<synchronous>, transform_indices = @transform_12, window_bounds = array<i64: 1, 32>}, {transform_indices = @transform_13, window_bounds = array<i64: 1, 16, 32>}]} {
    %c0 = arith.constant 0 : index
    %c0_0 = arith.constant 0 : index
    %c0_1 = arith.constant 0 : index
    %0 = vector.load %arg1[%c0, %c0_0, %c0_1] : memref<1x8x32xf32, #tpu.memory_space<vmem>>, vector<1x8x32xf32>
    %1 = vector.shape_cast %0 : vector<1x8x32xf32> to vector<8x32xf32>
    %c0_2 = arith.constant 0 : index
    %c0_3 = arith.constant 0 : index
    %c0_4 = arith.constant 0 : index
    %2 = vector.load %arg2[%c0_2, %c0_3, %c0_4] : memref<1x8x32xf32, #tpu.memory_space<vmem>>, vector<1x8x32xf32>
    %3 = vector.shape_cast %2 : vector<1x8x32xf32> to vector<8x32xf32>
    %c0_5 = arith.constant 0 : index
    %c0_6 = arith.constant 0 : index
    %4 = vector.load %arg3[%c0_5, %c0_6] : memref<32x96xf32, #tpu.memory_space<vmem>>, vector<32x96xf32>
    %cst = arith.constant dense<0.000000e+00> : vector<8x96xf32>
    %5 = tpu.matmul %1, %4, %cst {dimension_numbers = #tpu.dot_dimension_numbers<[1], [0], [0], [1], [0, 0, 1, 1], [], []>} : vector<8x32xf32>, vector<32x96xf32>, vector<8x96xf32> -> vector<8x96xf32>
    %c0_7 = arith.constant 0 : index
    %c0_8 = arith.constant 0 : index
    %6 = vector.load %arg4[%c0_7, %c0_8] : memref<1x96xf32, #tpu.memory_space<vmem>>, vector<1x96xf32>
    %7 = vector.broadcast %6 : vector<1x96xf32> to vector<8x96xf32>
    %8 = arith.addf %5, %7 : vector<8x96xf32>
    %c0_9 = arith.constant 0 : index
    %c0_10 = arith.constant 0 : index
    %9 = vector.load %arg5[%c0_9, %c0_10] : memref<32x96xf32, #tpu.memory_space<vmem>>, vector<32x96xf32>
    %cst_11 = arith.constant dense<0.000000e+00> : vector<8x96xf32>
    %10 = tpu.matmul %3, %9, %cst_11 {dimension_numbers = #tpu.dot_dimension_numbers<[1], [0], [0], [1], [0, 0, 1, 1], [], []>} : vector<8x32xf32>, vector<32x96xf32>, vector<8x96xf32> -> vector<8x96xf32>
    %c0_12 = arith.constant 0 : index
    %c0_13 = arith.constant 0 : index
    %11 = vector.load %arg6[%c0_12, %c0_13] : memref<1x96xf32, #tpu.memory_space<vmem>>, vector<1x96xf32>
    %12 = vector.broadcast %11 : vector<1x96xf32> to vector<8x96xf32>
    %13 = arith.addf %10, %12 : vector<8x96xf32>
    %14 = vector.extract_strided_slice %8 {offsets = [0, 0], sizes = [8, 32], strides = [1, 1]} : vector<8x96xf32> to vector<8x32xf32>
    %15 = vector.extract_strided_slice %8 {offsets = [0, 32], sizes = [8, 32], strides = [1, 1]} : vector<8x96xf32> to vector<8x32xf32>
    %16 = vector.extract_strided_slice %8 {offsets = [0, 64], sizes = [8, 32], strides = [1, 1]} : vector<8x96xf32> to vector<8x32xf32>
    %17 = vector.extract_strided_slice %13 {offsets = [0, 0], sizes = [8, 32], strides = [1, 1]} : vector<8x96xf32> to vector<8x32xf32>
    %18 = vector.extract_strided_slice %13 {offsets = [0, 32], sizes = [8, 32], strides = [1, 1]} : vector<8x96xf32> to vector<8x32xf32>
    %19 = vector.extract_strided_slice %13 {offsets = [0, 64], sizes = [8, 32], strides = [1, 1]} : vector<8x96xf32> to vector<8x32xf32>
    %c0_14 = arith.constant 0 : index
    %c0_15 = arith.constant 0 : index
    %20 = vector.load %arg7[%c0_14, %c0_15] : memref<32x32xf32, #tpu.memory_space<vmem>>, vector<32x32xf32>
    %c0_16 = arith.constant 0 : index
    %c0_17 = arith.constant 0 : index
    %21 = vector.load %arg8[%c0_16, %c0_17] : memref<1x32xf32, #tpu.memory_space<vmem>>, vector<1x32xf32>
    %22 = arith.mulf %14, %14 : vector<8x32xf32>
    %cst_18 = arith.constant dense<0.000000e+00> : vector<8x32xf32>
    %23 = tpu.matmul %22, %20, %cst_18 {dimension_numbers = #tpu.dot_dimension_numbers<[1], [0], [0], [1], [0, 0, 1, 1], [], []>} : vector<8x32xf32>, vector<32x32xf32>, vector<8x32xf32> -> vector<8x32xf32>
    %cst_19 = arith.constant 1.250000e-01 : f32
    %24 = vector.broadcast %cst_19 : f32 to vector<8x32xf32>
    %25 = arith.mulf %23, %24 : vector<8x32xf32>
    %cst_20 = arith.constant 9.99999997E-7 : f32
    %26 = vector.broadcast %cst_20 : f32 to vector<8x32xf32>
    %27 = arith.addf %25, %26 : vector<8x32xf32>
    %28 = math.rsqrt %27 : vector<8x32xf32>
    %29 = arith.mulf %14, %28 : vector<8x32xf32>
    %30 = vector.broadcast %21 : vector<1x32xf32> to vector<8x32xf32>
    %31 = arith.mulf %29, %30 : vector<8x32xf32>
    %c0_21 = arith.constant 0 : index
    %c0_22 = arith.constant 0 : index
    %32 = vector.load %arg9[%c0_21, %c0_22] : memref<1x32xf32, #tpu.memory_space<vmem>>, vector<1x32xf32>
    %33 = arith.mulf %15, %15 : vector<8x32xf32>
    %cst_23 = arith.constant dense<0.000000e+00> : vector<8x32xf32>
    %34 = tpu.matmul %33, %20, %cst_23 {dimension_numbers = #tpu.dot_dimension_numbers<[1], [0], [0], [1], [0, 0, 1, 1], [], []>} : vector<8x32xf32>, vector<32x32xf32>, vector<8x32xf32> -> vector<8x32xf32>
    %cst_24 = arith.constant 1.250000e-01 : f32
    %35 = vector.broadcast %cst_24 : f32 to vector<8x32xf32>
    %36 = arith.mulf %34, %35 : vector<8x32xf32>
    %cst_25 = arith.constant 9.99999997E-7 : f32
    %37 = vector.broadcast %cst_25 : f32 to vector<8x32xf32>
    %38 = arith.addf %36, %37 : vector<8x32xf32>
    %39 = math.rsqrt %38 : vector<8x32xf32>
    %40 = arith.mulf %15, %39 : vector<8x32xf32>
    %41 = vector.broadcast %32 : vector<1x32xf32> to vector<8x32xf32>
    %42 = arith.mulf %40, %41 : vector<8x32xf32>
    %c0_26 = arith.constant 0 : index
    %c0_27 = arith.constant 0 : index
    %43 = vector.load %arg10[%c0_26, %c0_27] : memref<1x32xf32, #tpu.memory_space<vmem>>, vector<1x32xf32>
    %44 = arith.mulf %17, %17 : vector<8x32xf32>
    %cst_28 = arith.constant dense<0.000000e+00> : vector<8x32xf32>
    %45 = tpu.matmul %44, %20, %cst_28 {dimension_numbers = #tpu.dot_dimension_numbers<[1], [0], [0], [1], [0, 0, 1, 1], [], []>} : vector<8x32xf32>, vector<32x32xf32>, vector<8x32xf32> -> vector<8x32xf32>
    %cst_29 = arith.constant 1.250000e-01 : f32
    %46 = vector.broadcast %cst_29 : f32 to vector<8x32xf32>
    %47 = arith.mulf %45, %46 : vector<8x32xf32>
    %cst_30 = arith.constant 9.99999997E-7 : f32
    %48 = vector.broadcast %cst_30 : f32 to vector<8x32xf32>
    %49 = arith.addf %47, %48 : vector<8x32xf32>
    %50 = math.rsqrt %49 : vector<8x32xf32>
    %51 = arith.mulf %17, %50 : vector<8x32xf32>
    %52 = vector.broadcast %43 : vector<1x32xf32> to vector<8x32xf32>
    %53 = arith.mulf %51, %52 : vector<8x32xf32>
    %c0_31 = arith.constant 0 : index
    %c0_32 = arith.constant 0 : index
    %54 = vector.load %arg11[%c0_31, %c0_32] : memref<1x32xf32, #tpu.memory_space<vmem>>, vector<1x32xf32>
    %55 = arith.mulf %18, %18 : vector<8x32xf32>
    %cst_33 = arith.constant dense<0.000000e+00> : vector<8x32xf32>
    %56 = tpu.matmul %55, %20, %cst_33 {dimension_numbers = #tpu.dot_dimension_numbers<[1], [0], [0], [1], [0, 0, 1, 1], [], []>} : vector<8x32xf32>, vector<32x32xf32>, vector<8x32xf32> -> vector<8x32xf32>
    %cst_34 = arith.constant 1.250000e-01 : f32
    %57 = vector.broadcast %cst_34 : f32 to vector<8x32xf32>
    %58 = arith.mulf %56, %57 : vector<8x32xf32>
    %cst_35 = arith.constant 9.99999997E-7 : f32
    %59 = vector.broadcast %cst_35 : f32 to vector<8x32xf32>
    %60 = arith.addf %58, %59 : vector<8x32xf32>
    %61 = math.rsqrt %60 : vector<8x32xf32>
    %62 = arith.mulf %18, %61 : vector<8x32xf32>
    %63 = vector.broadcast %54 : vector<1x32xf32> to vector<8x32xf32>
    %64 = arith.mulf %62, %63 : vector<8x32xf32>
    %65 = tpu.concatenate %53, %31 in 0 : vector<8x32xf32>, vector<8x32xf32> -> vector<16x32xf32>
    %66 = tpu.concatenate %64, %42 in 0 : vector<8x32xf32>, vector<8x32xf32> -> vector<16x32xf32>
    %67 = tpu.concatenate %19, %16 in 0 : vector<8x32xf32>, vector<8x32xf32> -> vector<16x32xf32>
    %68 = arith.truncf %65 : vector<16x32xf32> to vector<16x32xbf16>
    %69 = arith.truncf %66 : vector<16x32xf32> to vector<16x32xbf16>
    %70 = arith.truncf %67 : vector<16x32xf32> to vector<16x32xbf16>
    %71 = vector.extract_strided_slice %68 {offsets = [0, 0], sizes = [16, 8], strides = [1, 1]} : vector<16x32xbf16> to vector<16x8xbf16>
    %72 = vector.extract_strided_slice %69 {offsets = [0, 0], sizes = [16, 8], strides = [1, 1]} : vector<16x32xbf16> to vector<16x8xbf16>
    %73 = vector.extract_strided_slice %70 {offsets = [0, 0], sizes = [16, 8], strides = [1, 1]} : vector<16x32xbf16> to vector<16x8xbf16>
    %cst_36 = arith.constant dense<0.000000e+00> : vector<16x16xf32>
    %74 = tpu.matmul %71, %72, %cst_36 {dimension_numbers = #tpu.dot_dimension_numbers<[1], [1], [0], [0], [0, 0, 1, 0], [], []>} : vector<16x8xbf16>, vector<16x8xbf16>, vector<16x16xf32> -> vector<16x16xf32>
    %cst_37 = arith.constant 0.353553385 : f32
    %75 = vector.broadcast %cst_37 : f32 to vector<16x16xf32>
    %76 = arith.mulf %74, %75 : vector<16x16xf32>
    %cst_38 = arith.constant dense<0xFF800000> : vector<16xf32>
    %77 = vector.multi_reduction <maximumf>, %76, %cst_38 [1] : vector<16x16xf32> to vector<16xf32>
    %78 = vector.shape_cast %77 : vector<16xf32> to vector<16x1xf32>
    %79 = vector.broadcast %78 : vector<16x1xf32> to vector<16x16xf32>
    %80 = arith.subf %76, %79 : vector<16x16xf32>
    %81 = math.exp %80 : vector<16x16xf32>
    %cst_39 = arith.constant dense<0.000000e+00> : vector<16xf32>
    %82 = vector.multi_reduction <add>, %81, %cst_39 [1] : vector<16x16xf32> to vector<16xf32>
    %83 = vector.shape_cast %82 : vector<16xf32> to vector<16x1xf32>
    %84 = tpu.reciprocal %83 {approx = true} : vector<16x1xf32> -> vector<16x1xf32>
    %85 = vector.broadcast %84 : vector<16x1xf32> to vector<16x16xf32>
    %86 = arith.mulf %81, %85 : vector<16x16xf32>
    %87 = arith.truncf %86 : vector<16x16xf32> to vector<16x16xbf16>
    %cst_40 = arith.constant dense<0.000000e+00> : vector<16x8xf32>
    %88 = tpu.matmul %87, %73, %cst_40 {dimension_numbers = #tpu.dot_dimension_numbers<[1], [0], [0], [1], [0, 0, 1, 1], [], []>} : vector<16x16xbf16>, vector<16x8xbf16>, vector<16x8xf32> -> vector<16x8xf32>
    %89 = vector.extract_strided_slice %68 {offsets = [0, 8], sizes = [16, 8], strides = [1, 1]} : vector<16x32xbf16> to vector<16x8xbf16>
    %90 = vector.extract_strided_slice %69 {offsets = [0, 8], sizes = [16, 8], strides = [1, 1]} : vector<16x32xbf16> to vector<16x8xbf16>
    %91 = vector.extract_strided_slice %70 {offsets = [0, 8], sizes = [16, 8], strides = [1, 1]} : vector<16x32xbf16> to vector<16x8xbf16>
    %cst_41 = arith.constant dense<0.000000e+00> : vector<16x16xf32>
    %92 = tpu.matmul %89, %90, %cst_41 {dimension_numbers = #tpu.dot_dimension_numbers<[1], [1], [0], [0], [0, 0, 1, 0], [], []>} : vector<16x8xbf16>, vector<16x8xbf16>, vector<16x16xf32> -> vector<16x16xf32>
    %cst_42 = arith.constant 0.353553385 : f32
    %93 = vector.broadcast %cst_42 : f32 to vector<16x16xf32>
    %94 = arith.mulf %92, %93 : vector<16x16xf32>
    %cst_43 = arith.constant dense<0xFF800000> : vector<16xf32>
    %95 = vector.multi_reduction <maximumf>, %94, %cst_43 [1] : vector<16x16xf32> to vector<16xf32>
    %96 = vector.shape_cast %95 : vector<16xf32> to vector<16x1xf32>
    %97 = vector.broadcast %96 : vector<16x1xf32> to vector<16x16xf32>
    %98 = arith.subf %94, %97 : vector<16x16xf32>
    %99 = math.exp %98 : vector<16x16xf32>
    %cst_44 = arith.constant dense<0.000000e+00> : vector<16xf32>
    %100 = vector.multi_reduction <add>, %99, %cst_44 [1] : vector<16x16xf32> to vector<16xf32>
    %101 = vector.shape_cast %100 : vector<16xf32> to vector<16x1xf32>
    %102 = tpu.reciprocal %101 {approx = true} : vector<16x1xf32> -> vector<16x1xf32>
    %103 = vector.broadcast %102 : vector<16x1xf32> to vector<16x16xf32>
    %104 = arith.mulf %99, %103 : vector<16x16xf32>
    %105 = arith.truncf %104 : vector<16x16xf32> to vector<16x16xbf16>
    %cst_45 = arith.constant dense<0.000000e+00> : vector<16x8xf32>
    %106 = tpu.matmul %105, %91, %cst_45 {dimension_numbers = #tpu.dot_dimension_numbers<[1], [0], [0], [1], [0, 0, 1, 1], [], []>} : vector<16x16xbf16>, vector<16x8xbf16>, vector<16x8xf32> -> vector<16x8xf32>
    %107 = vector.extract_strided_slice %68 {offsets = [0, 16], sizes = [16, 8], strides = [1, 1]} : vector<16x32xbf16> to vector<16x8xbf16>
    %108 = vector.extract_strided_slice %69 {offsets = [0, 16], sizes = [16, 8], strides = [1, 1]} : vector<16x32xbf16> to vector<16x8xbf16>
    %109 = vector.extract_strided_slice %70 {offsets = [0, 16], sizes = [16, 8], strides = [1, 1]} : vector<16x32xbf16> to vector<16x8xbf16>
    %cst_46 = arith.constant dense<0.000000e+00> : vector<16x16xf32>
    %110 = tpu.matmul %107, %108, %cst_46 {dimension_numbers = #tpu.dot_dimension_numbers<[1], [1], [0], [0], [0, 0, 1, 0], [], []>} : vector<16x8xbf16>, vector<16x8xbf16>, vector<16x16xf32> -> vector<16x16xf32>
    %cst_47 = arith.constant 0.353553385 : f32
    %111 = vector.broadcast %cst_47 : f32 to vector<16x16xf32>
    %112 = arith.mulf %110, %111 : vector<16x16xf32>
    %cst_48 = arith.constant dense<0xFF800000> : vector<16xf32>
    %113 = vector.multi_reduction <maximumf>, %112, %cst_48 [1] : vector<16x16xf32> to vector<16xf32>
    %114 = vector.shape_cast %113 : vector<16xf32> to vector<16x1xf32>
    %115 = vector.broadcast %114 : vector<16x1xf32> to vector<16x16xf32>
    %116 = arith.subf %112, %115 : vector<16x16xf32>
    %117 = math.exp %116 : vector<16x16xf32>
    %cst_49 = arith.constant dense<0.000000e+00> : vector<16xf32>
    %118 = vector.multi_reduction <add>, %117, %cst_49 [1] : vector<16x16xf32> to vector<16xf32>
    %119 = vector.shape_cast %118 : vector<16xf32> to vector<16x1xf32>
    %120 = tpu.reciprocal %119 {approx = true} : vector<16x1xf32> -> vector<16x1xf32>
    %121 = vector.broadcast %120 : vector<16x1xf32> to vector<16x16xf32>
    %122 = arith.mulf %117, %121 : vector<16x16xf32>
    %123 = arith.truncf %122 : vector<16x16xf32> to vector<16x16xbf16>
    %cst_50 = arith.constant dense<0.000000e+00> : vector<16x8xf32>
    %124 = tpu.matmul %123, %109, %cst_50 {dimension_numbers = #tpu.dot_dimension_numbers<[1], [0], [0], [1], [0, 0, 1, 1], [], []>} : vector<16x16xbf16>, vector<16x8xbf16>, vector<16x8xf32> -> vector<16x8xf32>
    %125 = vector.extract_strided_slice %68 {offsets = [0, 24], sizes = [16, 8], strides = [1, 1]} : vector<16x32xbf16> to vector<16x8xbf16>
    %126 = vector.extract_strided_slice %69 {offsets = [0, 24], sizes = [16, 8], strides = [1, 1]} : vector<16x32xbf16> to vector<16x8xbf16>
    %127 = vector.extract_strided_slice %70 {offsets = [0, 24], sizes = [16, 8], strides = [1, 1]} : vector<16x32xbf16> to vector<16x8xbf16>
    %cst_51 = arith.constant dense<0.000000e+00> : vector<16x16xf32>
    %128 = tpu.matmul %125, %126, %cst_51 {dimension_numbers = #tpu.dot_dimension_numbers<[1], [1], [0], [0], [0, 0, 1, 0], [], []>} : vector<16x8xbf16>, vector<16x8xbf16>, vector<16x16xf32> -> vector<16x16xf32>
    %cst_52 = arith.constant 0.353553385 : f32
    %129 = vector.broadcast %cst_52 : f32 to vector<16x16xf32>
    %130 = arith.mulf %128, %129 : vector<16x16xf32>
    %cst_53 = arith.constant dense<0xFF800000> : vector<16xf32>
    %131 = vector.multi_reduction <maximumf>, %130, %cst_53 [1] : vector<16x16xf32> to vector<16xf32>
    %132 = vector.shape_cast %131 : vector<16xf32> to vector<16x1xf32>
    %133 = vector.broadcast %132 : vector<16x1xf32> to vector<16x16xf32>
    %134 = arith.subf %130, %133 : vector<16x16xf32>
    %135 = math.exp %134 : vector<16x16xf32>
    %cst_54 = arith.constant dense<0.000000e+00> : vector<16xf32>
    %136 = vector.multi_reduction <add>, %135, %cst_54 [1] : vector<16x16xf32> to vector<16xf32>
    %137 = vector.shape_cast %136 : vector<16xf32> to vector<16x1xf32>
    %138 = tpu.reciprocal %137 {approx = true} : vector<16x1xf32> -> vector<16x1xf32>
    %139 = vector.broadcast %138 : vector<16x1xf32> to vector<16x16xf32>
    %140 = arith.mulf %135, %139 : vector<16x16xf32>
    %141 = arith.truncf %140 : vector<16x16xf32> to vector<16x16xbf16>
    %cst_55 = arith.constant dense<0.000000e+00> : vector<16x8xf32>
    %142 = tpu.matmul %141, %127, %cst_55 {dimension_numbers = #tpu.dot_dimension_numbers<[1], [0], [0], [1], [0, 0, 1, 1], [], []>} : vector<16x16xbf16>, vector<16x8xbf16>, vector<16x8xf32> -> vector<16x8xf32>
    %143 = tpu.concatenate %88, %106, %124, %142 in 1 : vector<16x8xf32>, vector<16x8xf32>, vector<16x8xf32>, vector<16x8xf32> -> vector<16x32xf32>
    %144 = arith.truncf %143 : vector<16x32xf32> to vector<16x32xbf16>
    %145 = arith.extf %144 : vector<16x32xbf16> to vector<16x32xf32>
    %c0_56 = arith.constant 0 : index
    %c0_57 = arith.constant 0 : index
    %146 = vector.load %arg12[%c0_56, %c0_57] : memref<32x32xf32, #tpu.memory_space<vmem>>, vector<32x32xf32>
    %cst_58 = arith.constant dense<0.000000e+00> : vector<16x32xf32>
    %147 = tpu.matmul %145, %146, %cst_58 {dimension_numbers = #tpu.dot_dimension_numbers<[1], [0], [0], [1], [0, 0, 1, 1], [], []>} : vector<16x32xf32>, vector<32x32xf32>, vector<16x32xf32> -> vector<16x32xf32>
    %c0_59 = arith.constant 0 : index
    %c0_60 = arith.constant 0 : index
    %148 = vector.load %arg13[%c0_59, %c0_60] : memref<1x32xf32, #tpu.memory_space<vmem>>, vector<1x32xf32>
    %149 = vector.broadcast %148 : vector<1x32xf32> to vector<16x32xf32>
    %150 = arith.addf %147, %149 : vector<16x32xf32>
    %c0_61 = arith.constant 0 : index
    %c0_62 = arith.constant 0 : index
    %c0_63 = arith.constant 0 : index
    %151 = vector.load %arg14[%c0_61, %c0_62, %c0_63] : memref<1x16x32xf32, #tpu.memory_space<vmem>>, vector<1x16x32xf32>
    %152 = vector.shape_cast %151 : vector<1x16x32xf32> to vector<16x32xf32>
    %153 = vector.shape_cast %150 : vector<16x32xf32> to vector<1x16x32xf32>
    tpu.vector_store %arg14[%c0_61, %c0_62, %c0_63], %153 {strides = array<i32>} : memref<1x16x32xf32, #tpu.memory_space<vmem>>, vector<1x16x32xf32>,
    return
  }
  func.func @transform_0(%arg0: i32) -> (i32, i32, i32) {
    %c0_i32 = arith.constant 0 : i32
    %c0_i32_0 = arith.constant 0 : i32
    %c0_i32_1 = arith.constant 0 : i32
    return %arg0, %c0_i32, %c0_i32_0 : i32, i32, i32
  }
  func.func @transform_1(%arg0: i32) -> (i32, i32, i32) {
    %c0_i32 = arith.constant 0 : i32
    %c0_i32_0 = arith.constant 0 : i32
    %c0_i32_1 = arith.constant 0 : i32
    return %arg0, %c0_i32, %c0_i32_0 : i32, i32, i32
  }
  func.func @transform_2(%arg0: i32) -> (i32, i32) {
    %c0_i32 = arith.constant 0 : i32
    %c0_i32_0 = arith.constant 0 : i32
    %c0_i32_1 = arith.constant 0 : i32
    return %c0_i32, %c0_i32_0 : i32, i32
  }
  func.func @transform_3(%arg0: i32) -> (i32, i32) {
    %c0_i32 = arith.constant 0 : i32
    %c0_i32_0 = arith.constant 0 : i32
    %c0_i32_1 = arith.constant 0 : i32
    return %c0_i32, %c0_i32_0 : i32, i32
  }
  func.func @transform_4(%arg0: i32) -> (i32, i32) {
    %c0_i32 = arith.constant 0 : i32
    %c0_i32_0 = arith.constant 0 : i32
    %c0_i32_1 = arith.constant 0 : i32
    return %c0_i32, %c0_i32_0 : i32, i32
  }
  func.func @transform_5(%arg0: i32) -> (i32, i32) {
    %c0_i32 = arith.constant 0 : i32
    %c0_i32_0 = arith.constant 0 : i32
    %c0_i32_1 = arith.constant 0 : i32
    return %c0_i32, %c0_i32_0 : i32, i32
  }
  func.func @transform_6(%arg0: i32) -> (i32, i32) {
    %c0_i32 = arith.constant 0 : i32
    %c0_i32_0 = arith.constant 0 : i32
    %c0_i32_1 = arith.constant 0 : i32
    return %c0_i32, %c0_i32_0 : i32, i32
  }
  func.func @transform_7(%arg0: i32) -> (i32, i32) {
    %c0_i32 = arith.constant 0 : i32
    %c0_i32_0 = arith.constant 0 : i32
    %c0_i32_1 = arith.constant 0 : i32
    return %c0_i32, %c0_i32_0 : i32, i32
  }
  func.func @transform_8(%arg0: i32) -> (i32, i32) {
    %c0_i32 = arith.constant 0 : i32
    %c0_i32_0 = arith.constant 0 : i32
    %c0_i32_1 = arith.constant 0 : i32
    return %c0_i32, %c0_i32_0 : i32, i32
  }
  func.func @transform_9(%arg0: i32) -> (i32, i32) {
    %c0_i32 = arith.constant 0 : i32
    %c0_i32_0 = arith.constant 0 : i32
    %c0_i32_1 = arith.constant 0 : i32
    return %c0_i32, %c0_i32_0 : i32, i32
  }
  func.func @transform_10(%arg0: i32) -> (i32, i32) {
    %c0_i32 = arith.constant 0 : i32
    %c0_i32_0 = arith.constant 0 : i32
    %c0_i32_1 = arith.constant 0 : i32
    return %c0_i32, %c0_i32_0 : i32, i32
  }
  func.func @transform_11(%arg0: i32) -> (i32, i32) {
    %c0_i32 = arith.constant 0 : i32
    %c0_i32_0 = arith.constant 0 : i32
    %c0_i32_1 = arith.constant 0 : i32
    return %c0_i32, %c0_i32_0 : i32, i32
  }
  func.func @transform_12(%arg0: i32) -> (i32, i32) {
    %c0_i32 = arith.constant 0 : i32
    %c0_i32_0 = arith.constant 0 : i32
    %c0_i32_1 = arith.constant 0 : i32
    return %c0_i32, %c0_i32_0 : i32, i32
  }
  func.func @transform_13(%arg0: i32) -> (i32, i32, i32) {
    %c0_i32 = arith.constant 0 : i32
    %c0_i32_0 = arith.constant 0 : i32
    %c0_i32_1 = arith.constant 0 : i32
    return %arg0, %c0_i32, %c0_i32_0 : i32, i32, i32
  }
}

</mosaic_0001>

<bundles_post_ra>
// kernel: tpu_custom_call.1
= control target key start
LH: loop header
LB: loop body
LE: loop exit
PB: predicated region body
PF: predicated region fallthrough
CT: control target
= control target key end

     0   :  { %s2195_s0 = inlined_call_operand.hbm [shape: f32[2,8,32], index: 0, kind: input, shape index: {}]   ;;  %s2196_s1 = inlined_call_operand.hbm [shape: f32[2,8,32], index: 1, kind: input, shape index: {}]   ;;  %s2197_s2 = inlined_call_operand.hbm [shape: f32[32,96], index: 2, kind: input, shape index: {}]   ;;  %s2198_s3 = inlined_call_operand.vmem [shape: f32[1,96], index: 3, kind: input, shape index: {}]   ;;  %s2199_s4 = inlined_call_operand.hbm [shape: f32[32,96], index: 4, kind: input, shape index: {}]   ;;  %s2200_s5 = inlined_call_operand.vmem [shape: f32[1,96], index: 5, kind: input, shape index: {}]   ;;  %s2201_s6 = inlined_call_operand.hbm [shape: f32[32,32], index: 6, kind: input, shape index: {}]   ;;  %s2202_s7 = inlined_call_operand.vmem [shape: f32[1,32], index: 7, kind: input, shape index: {}]   ;;  %s2203_s8 = inlined_call_operand.vmem [shape: f32[1,32], index: 8, kind: input, shape index: {}]   ;;  %s2204_s9 = inlined_call_operand.vmem [shape: f32[1,32], index: 9, kind: input, shape index: {}]   ;;  %s2205_s10 = inlined_call_operand.vmem [shape: f32[1,32], index: 10, kind: input, shape index: {}]   ;;  %s2206_s11 = inlined_call_operand.hbm [shape: f32[32,32], index: 11, kind: input, shape index: {}]   ;;  %s2207_s12 = inlined_call_operand.vmem [shape: f32[1,32], index: 12, kind: input, shape index: {}]   ;;  %s2208_s13 = inlined_call_operand.hbm [shape: f32[2,16,32], index: 13, kind: output, shape index: {}]  }
   0x1   :  { %2218 = sst [smem:[#allocation27_spill]] %s2197_s2 }
   0x2   :  { %2219 = sst [smem:[#allocation28_spill]] %s2199_s4 }
   0x3   :  { %2220 = sst [smem:[#allocation29_spill]] %s2201_s6 }
   0x4   :  { %2221 = sst [smem:[#allocation30_spill]] %s2206_s11 }
   0x5   :  { %2222 = sst [smem:[#allocation31_spill]] %s2208_s13 }
   0x6   :  { %18 = vsyncpa [#allocation3], 0 }
   0x7   :  { %20 = vsyncpa [#allocation3 + $0x1], 0 }
   0x8   :  { %21 = vsyncpa [#allocation6], 0 }
   0x9   :  { %23 = vsyncpa [#allocation6 + $0x1], 0 }
   0xa   :  { %24 = vsyncpa [#allocation9], 0 }
   0xb   :  { %25 = vsyncpa [#allocation12], 0 }
   0xc   :  { %26 = vsyncpa [#allocation4], 0 }
   0xd   :  { %28 = vsyncpa [#allocation4 + $0x1], 0  ;;  %s1887_s25 = smov 0   ;;  %s1889_s26 = smov 0  }
   0xe   :  { %s1891_s27 = smov 0   ;;  %s1893_s28 = smov 0  }
   0xf LB: > { %2223 = sst [smem:[#allocation20_spill]] %s1781_s25  ;;  %s1911_s15 = sadd.s32 4294967295, %s1793_s28   ;;  %s1793_s28 = sphi %s1893_s28, %s2248_s28   ;;  %s1789_s27 = sphi %s1891_s27, %s2250_s27   ;;  %s1785_s26 = sphi %s1889_s26, %s2252_s26   ;;  %s1781_s25 = sphi %s1887_s25, %s2251_s25  }
  0x10   : > { %2224 = sst [smem:[#allocation21_spill]] %s1789_s27  ;;  %p1334_p0 = scmp.ge.s32.totalorder %s1793_s28, 1 }
  0x11   : > { %2225 = sst [smem:[#allocation22_spill]] %s1793_s28  ;;  %p55_p1 = scmp.eq.s32.totalorder %s1911_s15, 0 }
  0x12   : > { %s2226_s2 = sld [smem:[#allocation27_spill]]  ;;  %p348_p2 = scmp.lt.s32.totalorder %s1793_s28, 3 }
  0x13   : > { %s1795_s17 = smov [#allocation7]   ;;  %s2228_s4 = sld [smem:[#allocation28_spill]] }
  0x14   : > { %p1916_p3 = pnand %p1334_p0, %p348_p2  ;;  %s361_s18 = sshll.u32 %s1795_s17, 4  ;;  %s362_s18 = int_to_ptr.vmem [resolvable:$true] %s361_s18 }
  0x15   : > { %s2230_s6 = sld [smem:[#allocation29_spill]]  ;;  %s1796_s30 = smov [#allocation8]  }
  0x16   : > { %p1396_p4 = pneg %p1916_p3  ;;  %s378_s17 = sshll.u32 %s1796_s30, 4  ;;  %s379_s17 = int_to_ptr.vmem [resolvable:$true] %s378_s17 }
  0x17   : > { %s1798_s19 = smov 8   ;;  %s2231_s11 = sld [smem:[#allocation30_spill]] }
  0x18   : > { %s359_s14 = sshll.u32 %s2226_s2, 4  ;;  %p1928_p6 = pnand %p1396_p4, %p55_p1  ;;  %s360_s14 = int_to_ptr.hbm [resolvable:$true] %s359_s14 }
  0x19   : > { %s376_s21 = sshll.u32 %s2228_s4, 4  ;;  %s1797_s2 = smov 128   ;;  %s377_s21 = int_to_ptr.hbm [resolvable:$true] %s376_s21 }
  0x1a   : > { %1399 = dma.hbm_to_vmem [thread:$0]  (!%p1928_p6), %s360_s14, 512, %s362_s18, [#allocation6], %s1797_s2, %s1797_s2, %s1798_s19  }
  0x1b   : > { %s393_s29 = sshll.u32 %s2230_s6, 4  ;;  %s1799_s24 = smov [#allocation10]   ;;  %s394_s29 = int_to_ptr.hbm [resolvable:$true] %s393_s29 }
  0x1c   : > { %1402 = dma.hbm_to_vmem [thread:$0]  (!%p1928_p6), %s377_s21, 512, %s379_s17, [#allocation9], %s1797_s2, %s1797_s2, %s1798_s19  }
  0x1d   : > { %s419_s23 = sshll.u32 %s2231_s11, 4  ;;  %s395_s30 = sshll.u32 %s1799_s24, 4  ;;  %s420_s23 = int_to_ptr.hbm [resolvable:$true] %s419_s23  ;;  %s396_s30 = int_to_ptr.vmem [resolvable:$true] %s395_s30 }
  0x1e   : > { %1405 = dma.hbm_to_vmem [thread:$0]  (!%p1928_p6), %s394_s29, 512, %s396_s30, [#allocation9], %s1797_s2, %s1797_s2, %s1798_s19  }
  0x1f   : > { %s1800_s14 = smov [#allocation11]   ;;  %s1333_s4 = sadd.s32 4294967294, %s1793_s28  }
  0x20   : > { %s421_s18 = sshll.u32 %s1800_s14, 4  ;;  %s1948_s21 = sadd.s32 1, %s1793_s28   ;;  %s422_s18 = int_to_ptr.vmem [resolvable:$true] %s421_s18 }
  0x21   : > { %1408 = dma.hbm_to_vmem [thread:$0]  (!%p1928_p6), %s420_s23, 512, %s422_s18, [#allocation12], %s1797_s2, %s1797_s2, %s1798_s19  }
  0x22   : > { %2232 = sst [smem:[#allocation23_spill]] %s1948_s21  ;;  %s38_s17 = ssub.s32 %s1793_s28, %s1948_s21 }
  0x23   : > { %s41_s20 = sadd.s32 1, %s1789_s27  ;;  %p39_p7 = scmp.eq.s32.totalorder %s38_s17, 0 }
  0x24   : > { %p48_p8 = scmp.ne.s32.totalorder %s1789_s27, %s1785_s26  ;;  %p49_p9 = scmp.eq.s32.totalorder %s1793_s28, 0 }
  0x25   : > { %p54_p10 = scmp.ne.s32.totalorder %s1785_s26, %s1781_s25  ;;  %p335_p13 = scmp.eq.s32.totalorder %s1911_s15, 1 }
  0x26   : > { %s1959_s29 = scalar_select %p39_p7, %s1789_s27, %s41_s20  }
  0x27   : > { %p1961_p11 = por %p49_p9, %p48_p8  ;;  %p1967_p12 = por %p55_p1, %p54_p10 }
  0x28   : > { %2233 = sst [smem:[#allocation24_spill]] %s1959_s29  ;;  %p341_p0 = scmp.eq.s32.totalorder %s1333_s4, 1 }
  0x29   : > { %p1424_p2 = scmp.lt.s32.totalorder %s1793_s28, 2  ;;  %s438_s22 = sand.u32 1, %s1789_s27  }
  0x2a   : > { %p1974_p4 = por %p335_p13, %p48_p8  ;;  %p1978_p6 = por %p341_p0, %p54_p10 }
  0x2b   : > { %s1982_s30 = sshll.u32 %s438_s22, 3  ;;  %s1341_s14 = sshll.u32 %s1793_s28, 3 }
  0x2c   : > { %s2236_s19 = scalar_select %p1974_p4, 1, 0 }
  0x2d   : > { %s2238_s23 = scalar_select %p1978_p6, 1, 0 }
  0x2e   : > { %2237 = sst [smem:[#allocation25_spill]] %s2236_s19  ;;  %s446_s20 = scalar_lea.hbm %s2195_s0, %s1341_s14 }
  0x2f   : > { %2239 = sst [smem:[#allocation26_spill]] %s2238_s23  ;;  %s442_s6 = scalar_lea.vmem [#allocation2], %s1982_s30 }
  0x30   : > { %s450_s4 = sshll.u32 %s442_s6, 4  ;;  %s448_s11 = sshll.u32 %s446_s20, 4  ;;  %s451_s4 = int_to_ptr.vmem [resolvable:$true] %s450_s4  ;;  %s449_s11 = int_to_ptr.hbm [resolvable:$true] %s448_s11 }
  0x31   : > { %p1991_p7 = pnand %p1424_p2, %p1961_p11  ;;  %s465_s23 = scalar_lea.hbm %s2196_s1, %s1341_s14 }
  0x32   : > { %s457_s25 = sand.u32 1, %s1793_s28   ;;  %s439_s13 = scalar_lea.sflag [#allocation3], %s438_s22 }
  0x33   : > { %s1651_s18 = sshra.s32 %s449_s11, 4  ;;  %p1655_p9 = pneg %p1991_p7  ;;  %s1652_s18 = int_to_ptr.hbm [resolvable:$true] %s1651_s18 }
  0x34   : > { %s1653_s17 = scalar_lea.hbm %s1652_s18, 8  ;;  %s1658_s20 = scalar_lea.hbm %s2195_s0, 16 }
  0x35   : > { %p1654_p8 = scmp.ne.s32.totalorder %s1652_s18, %s1653_s17  ;;  %p1659_p13 = scmp.lt.s32.totalorder %s1652_s18, %s2195_s0 }
  0x36   : > { %p1660_p0 = scmp.lt.s32.totalorder %s1658_s20, %s1653_s17 }
  0x37   : > { %p1656_p10 = pnand %p1655_p9, %p1654_p8 }
  0x38   : > { %p1661_p2 = por %p1660_p0, %p1659_p13 }
  0x39   : > { %p1657_p11 = pneg %p1656_p10 }
  0x3b   : > { %p1662_p5 = pnand %p1661_p2, %p1657_p11 }
  0x3d   : > { %1665 = shalt.err (!%p1662_p5)
}
  0x3e   : > { %1412 = dma.hbm_to_vmem [thread:$0]  (!%p1991_p7), %s449_s11, 128, %s451_s4, %s439_s13  }
  0x3f   : > { %s467_s22 = sshll.u32 %s465_s23, 4  ;;  %s461_s14 = scalar_lea.vmem [#allocation5], %s1982_s30  ;;  %s468_s22 = int_to_ptr.hbm [resolvable:$true] %s467_s22 }
  0x40   : > { %s469_s28 = sshll.u32 %s461_s14, 4  ;;  %s458_s6 = scalar_lea.sflag [#allocation6], %s457_s25  ;;  %s470_s28 = int_to_ptr.vmem [resolvable:$true] %s469_s28 }
  0x41   : > { %s1681_s24 = sshra.s32 %s468_s22, 4  ;;  %s1688_s20 = scalar_lea.hbm %s2196_s1, 16  ;;  %s1682_s24 = int_to_ptr.hbm [resolvable:$true] %s1681_s24 }
  0x42   : > { %s1683_s19 = scalar_lea.hbm %s1682_s24, 8  ;;  %p1689_p5 = scmp.lt.s32.totalorder %s1682_s24, %s2196_s1 }
  0x43   : > { %p1684_p8 = scmp.ne.s32.totalorder %s1682_s24, %s1683_s19  ;;  %p1690_p13 = scmp.lt.s32.totalorder %s1688_s20, %s1683_s19 }
  0x45   : > { %p1686_p10 = pnand %p1684_p8, %p1655_p9  ;;  %p1691_p0 = por %p1690_p13, %p1689_p5 }
  0x47   : > { %p1687_p11 = pneg %p1686_p10 }
  0x49   : > { %p1692_p2 = pnand %p1691_p0, %p1687_p11 }
  0x4b   : > { %1695 = shalt.err (!%p1692_p2)
}
  0x4c   : > { %1415 = dma.hbm_to_vmem [thread:$0]  (!%p1991_p7), %s468_s22, 128, %s470_s28, %s458_s6  }
  0x4d   : > { %478 = sbr.rel (%p1916_p3) target bundleno = 1616 (0x650), region = 72  ;;  %s2027_s13 = sand.u32 (!%p1916_p3), 1, %s1785_s26  }
  0x4e   : > { %s1345_s25 = sshll.u32 (!%p1916_p3), %s2027_s13, 3  ;;  %s481_s23 = scalar_lea.sflag (!%p1916_p3), [#allocation3], %s2027_s13 }
  0x4f   : > { %s484_s30 = scalar_lea.vmem (!%p1916_p3), [#allocation2], %s1345_s25 }
  0x52   : > { %1756 = dma.done.wait (%p1967_p12), %s481_s23, 128  }
  0x53   : > { %1758 = vsyncadd (%p1967_p12), %s481_s23, 4294967168  ;;  %s490_s28 = sand.u32 1, %s1911_s15   ;;  %s494_s16 = scalar_lea.vmem [#allocation5], %s1345_s25 }
  0x54   : > { %s491_s29 = scalar_lea.sflag [#allocation6], %s490_s28 }
  0x55   : > { %1760 = dma.done.wait (%p1967_p12), %s491_s29, 128  }
  0x56   : > { %1762 = vsyncadd (%p1967_p12), %s491_s29, 4294967168 }
  0x57   : > { %1764 = dma.done.wait (%p55_p1), [#allocation6], 512  }
  0x58   : > { %1766 = vsyncadd (%p55_p1), [#allocation6], 4294966784 }
  0x59   : > { %1768 = dma.done.wait (%p55_p1), [#allocation9], 1024  }
  0x5a   : > { %1770 = vsyncadd (%p55_p1), [#allocation9], 4294966272 }
  0x5b   : > { %1772 = dma.done.wait (%p55_p1), [#allocation12], 512  }
  0x5c   : > { %1774 = vsyncadd (%p55_p1), [#allocation12], 4294966784  ;;  %v569_v0 = vld [vmem:[#allocation7 + $0x18] sm:$0xff]  ;;  %v568_v2 = vld [vmem:[#allocation7 + $0x10] sm:$0xff]  ;;  %vm574_vm0 = vcmask 261120   ;;  %s1801_s22 = smov 96  }
  0x5d   : > { %v601_v1 = vld [vmem:[#allocation8 + $0x18] sm:$0xff]  ;;  %590 = vmatpush.msra.mxu0 %v569_v0  ;;  %v600_v3 = vld [vmem:[#allocation8 + $0x10] sm:$0xff]  ;;  %v567_v4 = vld [vmem:[#allocation7 + $0x8] sm:$0xff]  ;;  %s1802_s24 = smov 32   ;;  %s1803_s23 = smov 80   ;;  %vm831_vm13 = vcmask 64512  }
  0x5e   : > { %621 = vmatpush.msra.mxu1 %v601_v1  ;;  %v599_v5 = vld [vmem:[#allocation8 + $0x8] sm:$0xff]  ;;  %v566_v6 = vld [vmem:[#allocation7] sm:$0xff]  ;;  %v632_v9 = vld [vmem:[#allocation10 + $0x18] sm:$0xff]  ;;  %s1805_s28 = smov 72   ;;  %s1806_s29 = smov 112   ;;  %vm854_vm14 = vcmask 130048  }
  0x5f   : > { %v598_v7 = vld [vmem:[#allocation8] sm:$0xff]  ;;  %591 = vmatpush.msra.mxu0 %v568_v2  ;;  %v565_v10 = vld [vmem:[%s494_s16] sm:$0xff]  ;;  %650 = vmatpush.msra.mxu3 %v632_v9  ;;  %v630_v12 = vld [vmem:[#allocation10 + $0x8] sm:$0xff]  ;;  %s1807_s16 = smov 120   ;;  %s1808_s2 = smov 104   ;;  %vm1138_vm15 = vcmask 195584  }
  0x60   : > { %622 = vmatpush.msra.mxu1 %v600_v3  ;;  %v564_v8 = vld [vmem:[%s484_s30] sm:$0xff]  ;;  %v631_v11 = vld [vmem:[#allocation10 + $0x10] sm:$0xff]  ;;  %s1804_s30 = smov 88   ;;  %s1809_s19 = smov 56  }
  0x61   : > { %592 = vmatpush.msra.mxu0 %v567_v4  ;;  %651 = vmatpush.msra.mxu3 %v631_v11  ;;  %v629_v13 = vld [vmem:[#allocation10] sm:$0xff]  ;;  %s1810_s4 = smov 48   ;;  %s1811_s21 = smov 64  }
  0x62   : > { %623 = vmatpush.msra.mxu1 %v599_v5  ;;  %v1484_v14 = vld [vmem:[%s2198_s3] ss:$0 sm:$0xff]  ;;  %s1813_s14 = smov 8   ;;  %s1814_s6 = smov 24  }
  0x63   : > { %593 = vmatpush.msra.mxu0 %v566_v6  ;;  %652 = vmatpush.msra.mxu3 %v630_v12  ;;  %v1485_v15 = vld [vmem:[%s2200_s5] ss:$0 sm:$0xff]  ;;  %s1351_s18 = sshll.u32 %s2027_s13, 4  ;;  %s1373_s27 = sshll.u32 %s1911_s15, 4 }
  0x64   : > { %624 = vmatpush.msra.mxu1 %v598_v7  ;;  %1352 = vmatmul.msk.f32.vlgmr.msra.gmra.mxu0 %vm574_vm0, %v564_v8  ;;  %v1486_v25 = vld [vmem:[%s2203_s8] ss:$0 sm:$0xff]  ;;  %s562_s25 = scalar_lea.vmem [#allocation13], %s1351_s18 }
  0x65   : > { %1353 = vmatmul.msk.f32.vlgmr.msra.gmra.mxu1 %vm574_vm0, %v565_v10  ;;  %740 = vmatpush.msrb.mxu0 %v632_v9  ;;  %v1487_v32 = vld [vmem:[%s2205_s10] ss:$0 sm:$0xff] }
  0x66   : > { %782 = vmatpush.msrb.mxu1 %v632_v9  ;;  %653 = vmatpush.msra.mxu3 %v629_v13  ;;  %v1488_v10 = vld [vmem:[%s2202_s7] ss:$0 sm:$0xff] }
  0x67   : > { %741 = vmatpush.msrb.mxu0 %v631_v11  ;;  %719 = vrot.lane.b32.xlu2 %v1486_v25, %s1802_s24 }
  0x68   : > { %783 = vmatpush.msrb.mxu1 %v631_v11  ;;  %692 = vmatpush.msrb.mxu3 %v632_v9 }
  0x69   : > { %742 = vmatpush.msrb.mxu0 %v630_v12 }
  0x6a   : > { %784 = vmatpush.msrb.mxu1 %v630_v12  ;;  %693 = vmatpush.msrb.mxu3 %v631_v11 }
  0x6b   : > { %743 = vmatpush.msrb.mxu0 %v629_v13 }
  0x6c   : > { %785 = vmatpush.msrb.mxu1 %v629_v13  ;;  %694 = vmatpush.msrb.mxu3 %v630_v12 }
  0x6e   : > { %695 = vmatpush.msrb.mxu3 %v629_v13 }
  0x6f   : > { %809 = vrot.lane.b32.xlu2 %v1487_v32, %s1802_s24 }
  0xc1   : > { %v720_v61 = vpop.permute.xlu2 %719 }
  0xc9   : > { %v810_v7 = vpop.permute.xlu2 %809 }
  0xe1   : > { %v595_v16 = vpop.f32.mrf.mxu0 }
  0xe2   : > { %v626_v17 = vpop.f32.mrf.mxu1  ;;  %v2060_v18 = vadd.f32 %v1484_v14, %v595_v16  ;;  %v1489_v14 = vld [vmem:[%s2204_s9] ss:$0 sm:$0xff] }
  0xe3   : > { %v2062_v19 = vadd.f32 %v1485_v15, %v626_v17 }
  0xe4   : > { %v634_v21 = vmul.f32 %v2060_v18, %v2060_v18 }
  0xe5   : > { %v724_v20 = vmul.f32 %v2062_v19, %v2062_v19 }
  0xe6   : > { %676 = vrot.lane.b32.xlu0 %v634_v21, %s1801_s22  ;;  %1354 = vmatmul.msk.f32.vlgmr.msra.gmra.mxu3 %vm574_vm0, %v634_v21 }
  0xe7   : > { %1356 = vmatmul.msk.f32.vlgmr.msrb.gmra.mxu0 %vm574_vm0, %v724_v20 }
  0xee   : > { %766 = vrot.lane.b32.xlu0 %v724_v20, %s1801_s22 }
 0x158   : > { %v677_v22 = vpop.permute.xlu0 %676 }
 0x159   : > { %1355 = vmatmul.msk.f32.vlgmr.msrb.gmra.mxu3 %vm574_vm0, %v677_v22 }
 0x160   : > { %v767_v23 = vpop.permute.xlu0 %766 }
 0x161   : > { %1357 = vmatmul.msk.f32.vlgmr.msrb.gmra.mxu1 %vm574_vm0, %v767_v23 }
 0x164   : > { %v745_v47 = vpop.f32.mrf.mxu0 }
 0x165   : > { %v748_v49 = vmul.f32 0.125, %v745_v47 }
 0x167   : > { %v749_v51 = vadd.f32 1e-06, %v748_v49 }
 0x169   : > { %v655_v24 = vpop.f32.mrf.mxu3  ;;  %vm756_vm7 = vweird.f32 %v749_v51 }
 0x16a   : > { %v658_v48 = vmul.f32 0.125, %v655_v24 }
 0x16c   : > { %v659_v50 = vadd.f32 1e-06, %v658_v48 }
 0x16e   : > { %vm666_vm11 = vweird.f32 %v659_v50 }
 0x1dc   : > { %v697_v26 = vpop.f32.mrf.mxu3 }
 0x1dd   : > { %v700_v27 = vmul.f32 0.125, %v697_v26 }
 0x1de   : > { %v787_v28 = vpop.f32.mrf.mxu1 }
 0x1df   : > { %v701_v29 = vadd.f32 1e-06, %v700_v27  ;;  %v790_v30 = vmul.f32 0.125, %v787_v28 }
 0x1e1   : > { %1491 = vrsqrt.f32 %v701_v29  ;;  %v791_v31 = vadd.f32 1e-06, %v790_v30  ;;  %vm708_vm2 = vweird.f32 %v701_v29 }
 0x1e3   : > { %1493 = vrsqrt.f32 %v791_v31  ;;  %vm798_vm4 = vweird.f32 %v791_v31 }
 0x1e4   : > { %1495 = vrsqrt.f32 %v659_v50 }
 0x1e5   : > { %1497 = vrsqrt.f32 %v749_v51 }
 0x1e7   : > { %v1492_v33 = vpop.eup %1491 }
 0x1e8   : > { %v703_v34 = vmul.f32 %v1492_v33, %v701_v29  ;;  %vm709_vm1 = vweird.f32 %v1492_v33 }
 0x1e9   : > { %v1494_v35 = vpop.eup %1493  ;;  %vm710_vm3 = vmor %vm708_vm2, %vm709_vm1 }
 0x1ea   : > { %v704_v36 = vmul.f32 %v1492_v33, %v703_v34  ;;  %v793_v37 = vmul.f32 %v1494_v35, %v791_v31  ;;  %vm799_vm5 = vweird.f32 %v1494_v35  ;;  %v1496_v52 = vpop.eup %1495 }
 0x1eb   : > { %vm800_vm6 = vmor %vm798_vm4, %vm799_vm5  ;;  %v1498_v53 = vpop.eup %1497  ;;  %v661_v54 = vmul.f32 %v1496_v52, %v659_v50  ;;  %vm667_vm9 = vweird.f32 %v1496_v52 }
 0x1ec   : > { %v794_v38 = vmul.f32 %v1494_v35, %v793_v37  ;;  %v705_v39 = vmul.f32 0.5, %v704_v36  ;;  %v751_v55 = vmul.f32 %v1498_v53, %v749_v51  ;;  %vm757_vm8 = vweird.f32 %v1498_v53  ;;  %vm668_vm12 = vmor %vm666_vm11, %vm667_vm9 }
 0x1ed   : > { %v662_v56 = vmul.f32 %v1496_v52, %v661_v54  ;;  %vm758_vm10 = vmor %vm756_vm7, %vm757_vm8 }
 0x1ee   : > { %v795_v40 = vmul.f32 0.5, %v794_v38  ;;  %v706_v41 = vsub.f32 1.5, %v705_v39  ;;  %v752_v57 = vmul.f32 %v1498_v53, %v751_v55 }
 0x1ef   : > { %v663_v58 = vmul.f32 0.5, %v662_v56 }
 0x1f0   : > { %v707_v42 = vmul.f32 %v1492_v33, %v706_v41  ;;  %v796_v44 = vsub.f32 1.5, %v795_v40  ;;  %v753_v59 = vmul.f32 0.5, %v752_v57 }
 0x1f1   : > { %v664_v60 = vsub.f32 1.5, %v663_v58 }
 0x1f2   : > { %v711_v43 = vsel %vm710_vm3, %v1492_v33, %v707_v42  ;;  %v797_v45 = vmul.f32 %v1494_v35, %v796_v44  ;;  %v754_v62 = vsub.f32 1.5, %v753_v59 }
 0x1f3   : > { %713 = vrot.lane.b32.xlu1 %v711_v43, %s1802_s24  ;;  %v665_v0 = vmul.f32 %v1496_v52, %v664_v60 }
 0x1f4   : > { %v801_v46 = vsel %vm800_vm6, %v1494_v35, %v797_v45  ;;  %v755_v2 = vmul.f32 %v1498_v53, %v754_v62 }
 0x1f5   : > { %v669_v3 = vsel %vm668_vm12, %v1496_v52, %v665_v0 }
 0x1f6   : > { %v759_v5 = vsel %vm758_vm10, %v1498_v53, %v755_v2  ;;  %v670_v8 = vmul.f32 %v669_v3, %v2060_v18 }
 0x1f7   : > { %v760_v11 = vmul.f32 %v759_v5, %v2062_v19 }
 0x1f8   : > { %v674_v16 = vmul.f32 %v1488_v10, %v670_v8 }
 0x1f9   : > { %v764_v21 = vmul.f32 %v1489_v14, %v760_v11 }
 0x1fa   : > { %v814_v23 = vpack.c.bf16 %v674_v16, %v674_v16 }
 0x1fb   : > { %803 = vrot.lane.b32.xlu1 %v801_v46, %s1802_s24  ;;  %v813_v24 = vpack.c.bf16 %v764_v21, %v764_v21  ;;  %s1815_s24 = smov 16  }
 0x1fc   : > { %v822_v25 = vunpack.c.l.b16 %v814_v23  ;;  %v818_v23 = vpack.c.bf16 %v2060_v18, %v2060_v18 }
 0x1fd   : > { %v821_v26 = vunpack.c.l.b16 %v813_v24  ;;  %v817_v24 = vpack.c.bf16 %v2062_v19, %v2062_v19 }
 0x1ff   : > { %v823_v27 = vpack.c.b16 %v822_v25, %v821_v26 }
 0x265   : > { %v714_v63 = vpop.permute.xlu1 %713 }
 0x266   : > { %v716_v1 = vmul.f32 %v714_v63, %v2060_v18 }
 0x268   : > { %v722_v4 = vmul.f32 %v720_v61, %v716_v1 }
 0x26a   : > { %v816_v12 = vpack.c.bf16 %v722_v4, %v722_v4 }
 0x26c   : > { %v827_v17 = vunpack.c.l.b16 %v816_v12 }
 0x26d   : > { %v804_v6 = vpop.permute.xlu1 %803 }
 0x26e   : > { %v806_v9 = vmul.f32 %v804_v6, %v2062_v19 }
 0x270   : > { %v812_v13 = vmul.f32 %v810_v7, %v806_v9 }
 0x272   : > { %v815_v15 = vpack.c.bf16 %v812_v13, %v812_v13 }
 0x274   : > { %v826_v20 = vunpack.c.l.b16 %v815_v15 }
 0x276   : > { %v828_v22 = vpack.c.b16 %v827_v17, %v826_v20 }
 0x278   : > { %974 = vrot.lane.b32.xlu2 %v828_v22, %s1803_s23  ;;  %905 = vrot.lane.b32.xlu1 %v828_v22, %s1804_s30 }
 0x279   : > { %829 = vrot.lane.b32.xlu0 %v828_v22, %s1801_s22  ;;  %s1812_s22 = smov 40  }
 0x280   : > { %1043 = vrot.lane.b32.xlu2 %v828_v22, %s1805_s28  ;;  %972 = vrot.lane.b32.xlu1 %v823_v27, %s1806_s29  ;;  %s2242_s28 = sld [smem:[#allocation31_spill]] }
 0x281   : > { %903 = vrot.lane.b32.xlu0 %v823_v27, %s1807_s16 }
 0x286   : > { %s2243_s29 = smov %s2242_s28  ;;  %s1195_s16 = scalar_lea.hbm %s2242_s28, %s1373_s27 }
 0x289   : > { %1041 = vrot.lane.b32.xlu0 %v823_v27, %s1808_s2  ;;  %s1196_s2 = sshll.u32 %s562_s25, 4  ;;  %s1197_s2 = int_to_ptr.vmem [resolvable:$true] %s1196_s2 }
 0x2d2   : > { %v975_v28 = vpop.permute.xlu2 %974 }
 0x2d3   : > { %v980_v35 = vsel %vm831_vm13, %v975_v28, 0 }
 0x2da   : > { %v1044_v29 = vpop.permute.xlu2 %1043 }
 0x2db   : > { %v1049_v33 = vsel %vm831_vm13, %v1044_v29, 0  ;;  %v881_v29 = vunpack.c.l.b16 %v818_v23  ;;  %v1146_v23 = vld [vmem:[#allocation11 + $0x10] sm:$0xff] }
 0x2ea   : > { %v906_v30 = vpop.permute.xlu1 %905 }
 0x2eb   : > { %v911_v31 = vsel %vm831_vm13, %v906_v30, 0  ;;  %v830_v32 = vpop.permute.xlu0 %829  ;;  %v880_v30 = vunpack.c.l.b16 %v817_v24  ;;  %v1145_v24 = vld [vmem:[#allocation11 + $0x8] sm:$0xff] }
 0x2ec   : > { %v836_v34 = vsel %vm831_vm13, %v830_v32, 0  ;;  %920 = vmatpush.bf16.xpose.msra.mxu0 %v911_v31 }
 0x2ed   : > { %845 = vmatpush.bf16.xpose.msra.mxu2 %v836_v34  ;;  %v882_v18 = vpack.c.b16 %v881_v29, %v880_v30 }
 0x2f2   : > { %v973_v37 = vpop.permute.xlu1 %972 }
 0x2f3   : > { %v904_v36 = vpop.permute.xlu0 %903 }
 0x2f4   : > { %1058 = vmatpush.bf16.xpose.msrb.mxu0 %v1049_v33  ;;  %1358 = vmatmul.msk.bf16.vlgmr.msra.gmra.mxu2 %vm831_vm13, %v823_v27 }
 0x2f5   : > { %989 = vmatpush.bf16.xpose.msrb.mxu2 %v980_v35  ;;  %1360 = vmatmul.msk.bf16.vlgmr.msra.gmra.mxu0 %vm831_vm13, %v904_v36 }
 0x2fb   : > { %v1042_v38 = vpop.permute.xlu0 %1041 }
 0x304   : > { %1362 = vmatmul.msk.bf16.vlgmr.msrb.gmra.mxu2 %vm831_vm13, %v973_v37 }
 0x305   : > { %1364 = vmatmul.msk.bf16.vlgmr.msrb.gmra.mxu0 %vm831_vm13, %v1042_v38 }
 0x372   : > { %v922_v39 = vpop.f32.mrf.mxu0 }
 0x373   : > { %v927_v40 = vmul.f32 0.35355338, %v922_v39 }
 0x375   : > { %v929_v41 = vsel %vm854_vm14, %v927_v40, -inf }
 0x376   : > { %930 = vmax.xlane.f32.xlu0 %v929_v41 }
 0x377   : > { %v847_v42 = vpop.f32.mrf.mxu2 }
 0x378   : > { %v852_v43 = vmul.f32 0.35355338, %v847_v42 }
 0x37a   : > { %v924_v44 = vpop.f32.mrf.mxu0  ;;  %v855_v46 = vsel %vm854_vm14, %v852_v43, -inf }
 0x37b   : > { %v928_v45 = vmul.f32 0.35355338, %v924_v44  ;;  %856 = vmax.xlane.f32.xlu1 %v855_v46 }
 0x37d   : > { %v932_v47 = vsel %vm854_vm14, %v928_v45, -inf }
 0x37e   : > { %933 = vmax.xlane.f32.xlu2 %v932_v47 }
 0x37f   : > { %v849_v48 = vpop.f32.mrf.mxu2 }
 0x380   : > { %v853_v49 = vmul.f32 0.35355338, %v849_v48 }
 0x382   : > { %v1060_v50 = vpop.f32.mrf.mxu0  ;;  %v858_v53 = vsel %vm854_vm14, %v853_v49, -inf }
 0x383   : > { %v2106_v51 = vmul.f32 0.35355338, %v1060_v50 }
 0x385   : > { %v1067_v52 = vsel %vm854_vm14, %v2106_v51, -inf }
 0x386   : > { %1068 = vmax.xlane.f32.xlu0 %v1067_v52  ;;  %859 = vmax.xlane.f32.xlu2 %v858_v53 }
 0x387   : > { %v991_v54 = vpop.f32.mrf.mxu2 }
 0x388   : > { %v996_v55 = vmul.f32 0.35355338, %v991_v54 }
 0x38a   : > { %v998_v56 = vsel %vm854_vm14, %v996_v55, -inf  ;;  %v1062_v57 = vpop.f32.mrf.mxu0 }
 0x38b   : > { %999 = vmax.xlane.f32.xlu1 %v998_v56  ;;  %v1066_v58 = vmul.f32 0.35355338, %v1062_v57 }
 0x38d   : > { %v1070_v61 = vsel %vm854_vm14, %v1066_v58, -inf }
 0x38f   : > { %v993_v59 = vpop.f32.mrf.mxu2 }
 0x390   : > { %v997_v60 = vmul.f32 0.35355338, %v993_v59 }
 0x392   : > { %v1001_v62 = vsel %vm854_vm14, %v997_v60, -inf }
 0x393   : > { %1071 = vmax.xlane.f32.xlu1 %v1070_v61  ;;  %1002 = vmax.xlane.f32.xlu2 %v1001_v62 }
 0x3e9   : > { %v931_v63 = vpop.xlane.xlu0 %930 }
 0x3ea   : > { %v935_v0 = vsub.f32 %v927_v40, %v931_v63 }
 0x3ec   : > { %v937_v1 = vmul.f32 1.442695, %v935_v0 }
 0x3ee   : > { %1499 = vpow2.f32 %v937_v1  ;;  %v857_v2 = vpop.xlane.xlu1 %856 }
 0x3ef   : > { %v861_v3 = vsub.f32 %v852_v43, %v857_v2 }
 0x3f1   : > { %v934_v4 = vpop.xlane.xlu2 %933  ;;  %v863_v5 = vmul.f32 1.442695, %v861_v3 }
 0x3f2   : > { %v936_v6 = vsub.f32 %v928_v45, %v934_v4 }
 0x3f3   : > { %1501 = vpow2.f32 %v863_v5 }
 0x3f4   : > { %v2114_v7 = vpop.eup %1499  ;;  %v939_v9 = vmul.f32 1.442695, %v936_v6 }
 0x3f5   : > { %v941_v8 = vsel %vm854_vm14, %v2114_v7, 0.0 }
 0x3f6   : > { %942 = vadd.xlane.f32.xlu1 %v941_v8  ;;  %1503 = vpow2.f32 %v939_v9 }
 0x3f9   : > { %v860_v10 = vpop.xlane.xlu2 %859  ;;  %v2118_v11 = vpop.eup %1501 }
 0x3fa   : > { %v862_v12 = vsub.f32 %v853_v49, %v860_v10  ;;  %v867_v13 = vsel %vm854_vm14, %v2118_v11, 0.0  ;;  %v1069_v39 = vpop.xlane.xlu0 %1068 }
 0x3fb   : > { %868 = vadd.xlane.f32.xlu2 %v867_v13  ;;  %v1073_v40 = vsub.f32 %v2106_v51, %v1069_v39 }
 0x3fc   : > { %v865_v14 = vmul.f32 1.442695, %v862_v12  ;;  %v1504_v16 = vpop.eup %1503 }
 0x3fd   : > { %v944_v21 = vsel %vm854_vm14, %v1504_v16, 0.0  ;;  %v1075_v41 = vmul.f32 1.442695, %v1073_v40 }
 0x3fe   : > { %1505 = vpow2.f32 %v865_v14  ;;  %v1000_v15 = vpop.xlane.xlu1 %999 }
 0x3ff   : > { %v1004_v17 = vsub.f32 %v996_v55, %v1000_v15 }
 0x401   : > { %v1006_v20 = vmul.f32 1.442695, %v1004_v17 }
 0x403   : > { %1507 = vpow2.f32 %v1006_v20  ;;  %945 = vadd.xlane.f32.xlu2 %v944_v21 }
 0x404   : > { %v1506_v22 = vpop.eup %1505 }
 0x405   : > { %v870_v25 = vsel %vm854_vm14, %v1506_v22, 0.0 }
 0x406   : > { %871 = vadd.xlane.f32.xlu0 %v870_v25  ;;  %v1072_v26 = vpop.xlane.xlu1 %1071  ;;  %v1003_v27 = vpop.xlane.xlu2 %1002  ;;  %v1144_v25 = vld [vmem:[#allocation11] sm:$0xff] }
 0x407   : > { %v1074_v28 = vsub.f32 %v1066_v58, %v1072_v26  ;;  %v1005_v33 = vsub.f32 %v997_v60, %v1003_v27 }
 0x409   : > { %v2128_v31 = vpop.eup %1507  ;;  %v1077_v32 = vmul.f32 1.442695, %v1074_v28  ;;  %v1008_v35 = vmul.f32 1.442695, %v1005_v33 }
 0x40a   : > { %v1010_v34 = vsel %vm854_vm14, %v2128_v31, 0.0 }
 0x40b   : > { %1509 = vpow2.f32 %v1077_v32  ;;  %1011 = vadd.xlane.f32.xlu2 %v1010_v34 }
 0x40c   : > { %1511 = vpow2.f32 %v1008_v35 }
 0x40d   : > { %1513 = vpow2.f32 %v1075_v41 }
 0x40f   : > { %952 = vrot.lane.b32.xlu1 %v882_v18, %s1809_s19  ;;  %s1198_s19 = sshll.u32 %s1195_s16, 4  ;;  %s1199_s19 = int_to_ptr.hbm [resolvable:$true] %s1198_s19 }
 0x411   : > { %v2132_v19 = vpop.eup %1509 }
 0x412   : > { %v1082_v36 = vsel %vm854_vm14, %v2132_v19, 0.0  ;;  %v1512_v37 = vpop.eup %1511 }
 0x413   : > { %1083 = vadd.xlane.f32.xlu2 %v1082_v36  ;;  %v1013_v38 = vsel %vm854_vm14, %v1512_v37, 0.0  ;;  %v1514_v42 = vpop.eup %1513  ;;  %v1490_v36 = vld [vmem:[%s2207_s12] ss:$0 sm:$0xff] }
 0x414   : > { %v1079_v43 = vsel %vm854_vm14, %v1514_v42, 0.0 }
 0x417   : > { %1021 = vrot.lane.b32.xlu1 %v882_v18, %s1810_s4  ;;  %s1184_s4 = scalar_lea.sflag [#allocation4], %s2027_s13 }
 0x41a   : > { %883 = vrot.lane.b32.xlu0 %v882_v18, %s1811_s21  ;;  %s1725_s21 = sshra.s32 %s1199_s19, 4  ;;  %s1726_s21 = int_to_ptr.hbm [resolvable:$true] %s1725_s21 }
 0x41b   : > { %1014 = vadd.xlane.f32.xlu2 %v1013_v38  ;;  %s1727_s15 = scalar_lea.hbm %s1726_s21, 16  ;;  %p1732_p7 = scmp.lt.s32.totalorder %s1726_s21, %s2243_s29 }
 0x41c   : > { %p1728_p1 = scmp.ne.s32.totalorder %s1726_s21, %s1727_s15 }
 0x41e   : > { %p1729_p3 = pnand %p1728_p1, %p1974_p4 }
 0x420   : > { %p1730_p12 = pneg %p1729_p3 }
 0x433   : > { %1090 = vrot.lane.b32.xlu2 %v882_v18, %s1812_s22 }
 0x444   : > { %1080 = vadd.xlane.f32.xlu0 %v1079_v43 }
 0x469   : > { %v943_v45 = vpop.xlane.xlu1 %942 }
 0x46a   : > { %1515 = vrcp.f32 %v943_v45 }
 0x46e   : > { %v869_v44 = vpop.xlane.xlu2 %868 }
 0x470   : > { %v1516_v47 = vpop.eup %1515 }
 0x471   : > { %v949_v51 = vmul.f32 %v1516_v47, %v2114_v7 }
 0x476   : > { %v946_v46 = vpop.xlane.xlu2 %945 }
 0x477   : > { %1517 = vrcp.f32 %v946_v46 }
 0x479   : > { %v872_v50 = vpop.xlane.xlu0 %871 }
 0x47a   : > { %1519 = vrcp.f32 %v872_v50 }
 0x47b   : > { %1521 = vrcp.f32 %v869_v44 }
 0x47d   : > { %v1518_v48 = vpop.eup %1517 }
 0x47e   : > { %v950_v49 = vmul.f32 %v1518_v48, %v1504_v16  ;;  %v1012_v52 = vpop.xlane.xlu2 %1011 }
 0x480   : > { %v951_v54 = vpack.c.bf16 %v950_v49, %v949_v51  ;;  %v1520_v56 = vpop.eup %1519 }
 0x481   : > { %v953_v53 = vpop.permute.xlu1 %952  ;;  %v1522_v57 = vpop.eup %1521  ;;  %v876_v58 = vmul.f32 %v1520_v56, %v1506_v22  ;;  %v1147_v22 = vld [vmem:[#allocation11 + $0x18] sm:$0xff] }
 0x482   : > { %965 = vmatpush.bf16.msra.mxu1 %v953_v53  ;;  %v875_v59 = vmul.f32 %v1522_v57, %v2118_v11  ;;  %1170 = vmatpush.msra.mxu2 %v1147_v22 }
 0x484   : > { %v877_v62 = vpack.c.bf16 %v876_v58, %v875_v59  ;;  %1171 = vmatpush.msra.mxu2 %v1146_v23 }
 0x485   : > { %1361 = vmatmul.msk.bf16.vlgmr.msra.gmra.mxu1 %vm854_vm14, %v951_v54 }
 0x486   : > { %v1084_v55 = vpop.xlane.xlu2 %1083  ;;  %1172 = vmatpush.msra.mxu2 %v1145_v24 }
 0x488   : > { %1173 = vmatpush.msra.mxu2 %v1144_v25 }
 0x489   : > { %v1022_v61 = vpop.permute.xlu1 %1021 }
 0x48c   : > { %v884_v60 = vpop.permute.xlu0 %883 }
 0x48d   : > { %896 = vmatpush.bf16.msra.mxu3 %v884_v60 }
 0x48e   : > { %v1015_v63 = vpop.xlane.xlu2 %1014 }
 0x48f   : > { %1523 = vrcp.f32 %v1015_v63 }
 0x490   : > { %1359 = vmatmul.msk.bf16.vlgmr.msra.gmra.mxu3 %vm854_vm14, %v877_v62  ;;  %1525 = vrcp.f32 %v1012_v52 }
 0x491   : > { %1034 = vmatpush.bf16.msrb.mxu3 %v1022_v61  ;;  %1527 = vrcp.f32 %v1084_v55 }
 0x495   : > { %v1524_v1 = vpop.eup %1523 }
 0x496   : > { %v1091_v0 = vpop.permute.xlu2 %1090  ;;  %v1526_v2 = vpop.eup %1525  ;;  %v1019_v3 = vmul.f32 %v1524_v1, %v1512_v37 }
 0x497   : > { %1103 = vmatpush.bf16.msrb.mxu1 %v1091_v0  ;;  %v1018_v4 = vmul.f32 %v1526_v2, %v2128_v31  ;;  %v1528_v7 = vpop.eup %1527 }
 0x498   : > { %v1088_v9 = vmul.f32 %v1528_v7, %v2132_v19 }
 0x499   : > { %v1020_v5 = vpack.c.bf16 %v1019_v3, %v1018_v4 }
 0x4a0   : > { %1363 = vmatmul.msk.bf16.vlgmr.msrb.gmra.mxu3 %vm854_vm14, %v1020_v5 }
 0x4b7   : > { %v1081_v6 = vpop.xlane.xlu0 %1080 }
 0x4b8   : > { %1529 = vrcp.f32 %v1081_v6 }
 0x4be   : > { %v1530_v8 = vpop.eup %1529 }
 0x4bf   : > { %v1087_v10 = vmul.f32 %v1530_v8, %v1514_v42 }
 0x4c1   : > { %v1089_v11 = vpack.c.bf16 %v1088_v9, %v1087_v10 }
 0x4c3   : > { %1365 = vmatmul.msk.bf16.vlgmr.msrb.gmra.mxu1 %vm854_vm14, %v1089_v11 }
 0x502   : > { %v967_v12 = vpop.f32.mrf.mxu1 }
 0x503   : > { %1112 = vrot.lane.b32.xlu1 %v967_v12, %s1813_s14 }
 0x50a   : > { %v969_v13 = vpop.f32.mrf.mxu1 }
 0x50b   : > { %1114 = vrot.lane.b32.xlu2 %v969_v13, %s1813_s14 }
 0x513   : > { %v898_v14 = vpop.f32.mrf.mxu3 }
 0x51b   : > { %v900_v15 = vpop.f32.mrf.mxu3 }
 0x523   : > { %v1036_v17 = vpop.f32.mrf.mxu3 }
 0x52b   : > { %v1038_v21 = vpop.f32.mrf.mxu3 }
 0x540   : > { %v1105_v16 = vpop.f32.mrf.mxu1 }
 0x541   : > { %1128 = vrot.lane.b32.xlu1 %v1105_v16, %s1814_s6 }
 0x548   : > { %v1107_v20 = vpop.f32.mrf.mxu1 }
 0x549   : > { %1120 = vrot.lane.b32.xlu1 %v1036_v17, %s1815_s24  ;;  %1130 = vrot.lane.b32.xlu0 %v1107_v20, %s1814_s6 }
 0x551   : > { %1122 = vrot.lane.b32.xlu1 %v1038_v21, %s1815_s24  ;;  %s1731_s24 = scalar_lea.hbm %s2243_s29, 32 }
 0x552   : > { %p1733_p9 = scmp.lt.s32.totalorder %s1731_s24, %s1727_s15 }
 0x554   : > { %p1734_p8 = por %p1733_p9, %p1732_p7 }
 0x556   : > { %p1735_p10 = pnand %p1734_p8, %p1730_p12 }
 0x565   : > { %v1115_v32 = vpop.permute.xlu2 %1114 }
 0x566   : > { %v1135_v33 = vsel %vm831_vm13, %v900_v15, %v1115_v32 }
 0x575   : > { %v1113_v26 = vpop.permute.xlu1 %1112 }
 0x576   : > { %v1134_v28 = vsel %vm831_vm13, %v898_v14, %v1113_v26 }
 0x5b3   : > { %v1129_v27 = vpop.permute.xlu1 %1128 }
 0x5bb   : > { %v1121_v29 = vpop.permute.xlu1 %1120  ;;  %v1131_v18 = vpop.permute.xlu0 %1130 }
 0x5bc   : > { %v1136_v30 = vsel %vm854_vm14, %v1134_v28, %v1121_v29 }
 0x5bd   : > { %v1139_v31 = vsel %vm1138_vm15, %v1136_v30, %v1129_v27 }
 0x5be   : > { %1366 = vmatmul.msk.f32.vlgmr.msra.gmra.mxu2 %vm574_vm0, %v1139_v31 }
 0x5c3   : > { %v1123_v34 = vpop.permute.xlu1 %1122 }
 0x5c4   : > { %v1137_v35 = vsel %vm854_vm14, %v1135_v33, %v1123_v34 }
 0x5c5   : > { %v1140_v19 = vsel %vm1138_vm15, %v1137_v35, %v1131_v18 }
 0x5c6   : > { %1367 = vmatmul.msk.f32.gmra.mxu2 %vm574_vm0, %v1140_v19 }
 0x641   : > { %v1175_v37 = vpop.f32.mrf.mxu2 }
 0x642   : > { %v1176_v38 = vadd.f32 %v1490_v36, %v1175_v37 }
 0x644   : > { %1181 = vst.msk [vmem:[%s562_s25] sm:$0xff] %vm574_vm0, %v1176_v38 }
 0x649   : > { %v1178_v39 = vpop.f32.mrf.mxu2 }
 0x64a   : > { %v1179_v40 = vadd.f32 %v1490_v36, %v1178_v39 }
 0x64c   : > { %1182 = vst.msk [vmem:[%s562_s25 + $0x8] sm:$0xff] %vm574_vm0, %v1179_v40 }
 0x64d   : > { %1738 = shalt.err (!%p1735_p10)
}
 0x64e   : > { %s1816_s13 = smov 128  }
 0x64f   : > { %1394 = dma.vmem_to_hbm [thread:$0]  (%p1974_p4), %s1197_s2, 256, %s1199_s19, %s1184_s4, %s1816_s13, %s1816_s13, %s1813_s14  }
 0x650 PF: > { %s2244_s20 = sld [smem:[#allocation20_spill]] }
 0x651   : > { %s2246_s25 = sld [smem:[#allocation22_spill]] }
 0x656   : > { %s1213_s23 = sand.u32 1, %s2244_s20  }
 0x657   : > { %p2247_p11 = scmp.ge.s32.totalorder %s2246_s25, 2  ;;  %s1214_s30 = scalar_lea.sflag [#allocation4], %s1213_s23 }
 0x659   : > { %p1417_p5 = pnand %p2247_p11, %p1978_p6 }
 0x65b   : > { %p1418_p13 = pneg %p1417_p5 }
 0x65d   : > { %1776 = dma.done.wait (%p1418_p13), %s1214_s30, 256  }
 0x65e   : > { %1778 = vsyncadd (%p1418_p13), %s1214_s30, 4294967040  ;;  %s2248_s28 = sld [smem:[#allocation23_spill]]  ;;  %s2251_s25 = smov %s1785_s26 }
 0x65f   : > { %s2249_s16 = sld [smem:[#allocation21_spill]] }
 0x660   : > { %s2250_s27 = sld [smem:[#allocation24_spill]] }
 0x664   : > { %p31_p0 = scmp.ge.s32.totalorder %s2248_s28, 4  }
 0x665   : > { %s2252_s26 = smov %s2249_s16 }
 0x666   :  { %33 = sbr.rel (!%p31_p0) target bundleno = 15 (0xf), region = 146 }
 0x66b   :  { %1220 = vsyncpa [#allocation3], 1 }
 0x66c   :  { %1222 = vsyncpa [#allocation3 + $0x1], 1 }
 0x66d   :  { %1223 = vsyncpa [#allocation6], 1 }
 0x66e   :  { %1225 = vsyncpa [#allocation6 + $0x1], 1 }
 0x66f   :  { %1226 = vsyncpa [#allocation9], 1 }
 0x670   :  { %1227 = vsyncpa [#allocation12], 1 }
 0x671   :  { %1228 = vsyncpa [#allocation4], 1 }
 0x672   :  { %1230 = vsyncpa [#allocation4 + $0x1], 1 }

</bundles_post_ra>
